<compile_context>
chip_gen: v7x
topology: tpu7x:2x2x1
jax: 0.10.0
libtpu: 0.0.40
codegen_flags: <defaults>
</compile_context>

<pallas_src>
import functools

import numpy as np
import jax
import jax.numpy as jnp
from jax import lax
from jax.experimental import pallas as pl
from jax.experimental.pallas import tpu as pltpu


# ------------------------------------ Pallas kernel ------------------------------------

def _pool_kernel(x_ref, o_ref, *, factor, method, t_out, seq_len):
    """Reduce `factor` consecutive rows of x_ref into one row of o_ref.

    x_ref: (t_out*factor, H) input block.  The last grid tile's DMA may over-read past
           `seq_len`; Pallas gives no guarantee on out-of-bounds block contents, so those
           rows are masked here before the reduction.
    o_ref: (t_out, H) output block (out-of-range output rows are discarded by Pallas).
    """
    # Global input-row index of window element k=0 for each local output row j.
    base = pl.program_id(1) * (t_out * factor)
    j = lax.broadcasted_iota(jnp.int32, (t_out, 1), 0)
    win_start = base + j * factor                                # (t_out, 1)

    if method == "avg":
        acc = None
        for k in range(factor):
            v = x_ref[pl.ds(k, t_out, stride=factor), :].astype(jnp.float32)
            v = jnp.where(win_start + k < seq_len, v, 0.0)       # mask ceil_mode / OOB rows
            acc = v if acc is None else acc + v
        # ceil_mode=True, padding=0: divide by the number of valid elements in the window
        cnt = jnp.clip(seq_len - win_start, 1, factor).astype(jnp.float32)
        o_ref[...] = (acc / cnt).astype(o_ref.dtype)
    else:  # "max"
        if jnp.issubdtype(x_ref.dtype, jnp.floating):
            neg = float("-inf")
        else:
            neg = int(jnp.iinfo(x_ref.dtype).min)
        acc = None
        for k in range(factor):
            v = x_ref[pl.ds(k, t_out, stride=factor), :]
            v = jnp.where(win_start + k < seq_len, v, neg)       # mask ceil_mode / OOB rows
            acc = v if acc is None else jnp.maximum(acc, v)
        o_ref[...] = acc


# ------------------------------------- tile sizing --------------------------------------

def _choose_tile(l_out, feat, factor, itemsize, batch):
    """Pick t_out (output rows per grid step), granule-aligned and VMEM-budgeted."""
    granule = 8 * max(1, 4 // itemsize)          # packed-sublane rows: 8 f32, 16 bf16, 32 int8
    rup = lambda v: -(-v // granule) * granule
    rdn = lambda v: max(granule, (v // granule) * granule)

    in_row = feat * itemsize * factor            # input bytes per output row
    out_row = feat * itemsize
    TARGET_IN = 2 << 20                          # ~2 MiB input block (HBM-roofline friendly)
    BUDGET = 24 << 20                            # cap on 2*(in+out) double-buffered working set

    t = rdn(max(granule, TARGET_IN // max(1, in_row)))
    t = min(t, rdn(max(granule, BUDGET // max(1, 2 * (in_row + out_row)))))
    t = min(t, rup(l_out))
    # keep at least 2 grid steps when possible so v7x's two TensorCores both get work
    while batch * (-(-l_out // t)) < 2 and t > granule:
        t = rdn(t // 2)
    return t


# --------------------------------------- wrapper ----------------------------------------

def downsample(x, method="none", factor=1, axis=1):
    """Pallas/TPU equivalent of Downsample.forward."""
    if method not in ("none", "avg", "max"):
        raise ValueError('method must be one of "none", "avg", "max"')
    factor = int(factor)

    if method == "none":
        # Pure strided copy: an XLA strided slice is a single strided DMA; the pooling
        # kernel would DMA factor-x the needed bytes (see perf review).
        idx = [slice(None)] * x.ndim
        idx[axis] = slice(None, None, factor)
        return x[tuple(idx)]

    if x.ndim != 3:
        raise ValueError("avg/max downsampling expects a 3-D tensor (as avg/max_pool1d do)")

    # Bring the pooled axis to dim 1 (no-op / no copy for the default axis=1).
    xs = x if axis == 1 else jnp.swapaxes(x, axis, 1)
    B, L, H = xs.shape
    L_out = -(-L // factor)                      # ceil(L / factor)  (ceil_mode=True)

    t_out = _choose_tile(L_out, H, factor, xs.dtype.itemsize, B)
    num_tiles = -(-L_out // t_out)

    in_block = t_out * factor * H * xs.dtype.itemsize
    out_block = t_out * H * xs.dtype.itemsize
    working = 2 * (in_block + out_block)         # double-buffered input + output
    vmem_limit = int(min(48 << 20, max(16 << 20, working + (4 << 20))))

    kernel = functools.partial(_pool_kernel, factor=factor, method=method,
                               t_out=t_out, seq_len=L)
    out = pl.pallas_call(
        kernel,
        out_shape=jax.ShapeDtypeStruct((B, L_out, H), xs.dtype),
        grid=(B, num_tiles),
        in_specs=[pl.BlockSpec((None, t_out * factor, H), lambda b, t: (b, t, 0))],
        out_specs=pl.BlockSpec((None, t_out, H), lambda b, t: (b, t, 0)),
        compiler_params=pltpu.CompilerParams(
            dimension_semantics=("parallel", "parallel"),
            vmem_limit_bytes=vmem_limit),
    )(xs)

    return out if axis == 1 else jnp.swapaxes(out, axis, 1)


# ----------------------------------------- main ------------------------------------------

if __name__ == "__main__":
    def ref_downsample(x, method, factor, axis):
        if method == "none":
            idx = [slice(None)] * x.ndim
            idx[axis] = slice(None, None, factor)
            return x[tuple(idx)]
        xs = jnp.swapaxes(x, axis, 1)
        B_, L_, H_ = xs.shape
        Lo = -(-L_ // factor)
        pad = Lo * factor - L_
        if method == "avg":
            xp = jnp.pad(xs.astype(jnp.float32), ((0, 0), (0, pad), (0, 0)))
            s = xp.reshape(B_, Lo, factor, H_).sum(axis=2)
            cnt = jnp.minimum(factor, L_ - jnp.arange(Lo) * factor).astype(jnp.float32)
            y = (s / cnt[None, :, None]).astype(x.dtype)
        else:
            fill = -jnp.inf if jnp.issubdtype(x.dtype, jnp.floating) else jnp.iinfo(x.dtype).min
            xp = jnp.pad(xs, ((0, 0), (0, pad), (0, 0)), constant_values=fill)
            y = xp.reshape(B_, Lo, factor, H_).max(axis=2)
        return jnp.swapaxes(y, axis, 1)

    key = jax.random.PRNGKey(0)

    # small deterministic case: seq=15 with factor=4 exercises the ceil_mode partial window
    B, L, H, factor = 2, 15, 32, 4
    x = jax.random.normal(key, (B, L, H), dtype=jnp.float32)
    for method in ("none", "avg", "max"):
        y = downsample(x, method=method, factor=factor, axis=1)
        jax.block_until_ready(y)
        assert y.shape == (B, -(-L // factor), H)
        np.testing.assert_allclose(np.asarray(y),
                                   np.asarray(ref_downsample(x, method, factor, 1)),
                                   rtol=1e-5, atol=1e-5)

    # bf16 max-pool over axis=2 (exercises the 16-row packed-sublane granule + axis swap)
    x2 = jax.random.normal(jax.random.PRNGKey(1), (2, 64, 33), dtype=jnp.bfloat16)
    y2 = downsample(x2, method="max", factor=5, axis=2)
    jax.block_until_ready(y2)
    np.testing.assert_allclose(np.asarray(y2.astype(jnp.float32)),
                               np.asarray(ref_downsample(x2, "max", 5, 2).astype(jnp.float32)),
                               rtol=0, atol=0)

    print("KERNEL_OK")
</pallas_src>

<mosaic_0001>
module attributes {stable_mosaic.version = 11 : i64} {
  func.func @_pool_kernel(%arg0: i32, %arg1: i32, %arg2: memref<1x32x32xf32, #tpu.memory_space<vmem>>, %arg3: memref<1x8x32xf32, #tpu.memory_space<vmem>>) attributes {dimension_semantics = [#tpu.dimension_semantics<parallel>, #tpu.dimension_semantics<parallel>], iteration_bounds = array<i64: 2, 1>, scalar_prefetch = 0 : i64, scratch_operands = 0 : i64, tpu.core_type = #tpu.core_type<tc>, window_params = [{transform_indices = @transform_0, window_bounds = array<i64: 1, 32, 32>}, {transform_indices = @transform_1, window_bounds = array<i64: 1, 8, 32>}]} {
    %c32_i32 = arith.constant 32 : i32
    %0 = arith.muli %arg1, %c32_i32 : i32
    %1 = tpu.iota {dimensions = array<i32: 0>} : vector<8x1xi32>
    %c4_i32 = arith.constant 4 : i32
    %2 = vector.broadcast %c4_i32 : i32 to vector<8x1xi32>
    %3 = arith.muli %1, %2 : vector<8x1xi32>
    %4 = vector.broadcast %0 : i32 to vector<8x1xi32>
    %5 = arith.addi %4, %3 : vector<8x1xi32>
    %c0 = arith.constant 0 : index
    %c0_0 = arith.constant 0 : index
    %c0_1 = arith.constant 0 : index
    %6 = tpu.strided_load %arg2[%c0, %c0_0, %c0_1] {strides = array<i32: 1, 4, 1>} : memref<1x32x32xf32, #tpu.memory_space<vmem>>, vector<1x8x32xf32>
    %7 = vector.shape_cast %6 : vector<1x8x32xf32> to vector<8x32xf32>
    %c0_i32 = arith.constant 0 : i32
    %8 = vector.broadcast %c0_i32 : i32 to vector<8x1xi32>
    %9 = arith.addi %5, %8 : vector<8x1xi32>
    %c15_i32 = arith.constant 15 : i32
    %10 = vector.broadcast %c15_i32 : i32 to vector<8x1xi32>
    %11 = arith.cmpi slt, %9, %10 : vector<8x1xi32>
    %cst = arith.constant 0.000000e+00 : f32
    %12 = vector.shape_cast %11 : vector<8x1xi1> to vector<8x1xi1>
    %13 = vector.broadcast %12 : vector<8x1xi1> to vector<8x32xi1>
    %14 = vector.broadcast %cst : f32 to vector<8x32xf32>
    %15 = arith.select %13, %7, %14 : vector<8x32xi1>, vector<8x32xf32>
    %c0_2 = arith.constant 0 : index
    %c1 = arith.constant 1 : index
    %c0_3 = arith.constant 0 : index
    %16 = tpu.strided_load %arg2[%c0_2, %c1, %c0_3] {strides = array<i32: 1, 4, 1>} : memref<1x32x32xf32, #tpu.memory_space<vmem>>, vector<1x8x32xf32>
    %17 = vector.shape_cast %16 : vector<1x8x32xf32> to vector<8x32xf32>
    %c1_i32 = arith.constant 1 : i32
    %18 = vector.broadcast %c1_i32 : i32 to vector<8x1xi32>
    %19 = arith.addi %5, %18 : vector<8x1xi32>
    %c15_i32_4 = arith.constant 15 : i32
    %20 = vector.broadcast %c15_i32_4 : i32 to vector<8x1xi32>
    %21 = arith.cmpi slt, %19, %20 : vector<8x1xi32>
    %cst_5 = arith.constant 0.000000e+00 : f32
    %22 = vector.shape_cast %21 : vector<8x1xi1> to vector<8x1xi1>
    %23 = vector.broadcast %22 : vector<8x1xi1> to vector<8x32xi1>
    %24 = vector.broadcast %cst_5 : f32 to vector<8x32xf32>
    %25 = arith.select %23, %17, %24 : vector<8x32xi1>, vector<8x32xf32>
    %26 = arith.addf %15, %25 : vector<8x32xf32>
    %c0_6 = arith.constant 0 : index
    %c2 = arith.constant 2 : index
    %c0_7 = arith.constant 0 : index
    %27 = tpu.strided_load %arg2[%c0_6, %c2, %c0_7] {strides = array<i32: 1, 4, 1>} : memref<1x32x32xf32, #tpu.memory_space<vmem>>, vector<1x8x32xf32>
    %28 = vector.shape_cast %27 : vector<1x8x32xf32> to vector<8x32xf32>
    %c2_i32 = arith.constant 2 : i32
    %29 = vector.broadcast %c2_i32 : i32 to vector<8x1xi32>
    %30 = arith.addi %5, %29 : vector<8x1xi32>
    %c15_i32_8 = arith.constant 15 : i32
    %31 = vector.broadcast %c15_i32_8 : i32 to vector<8x1xi32>
    %32 = arith.cmpi slt, %30, %31 : vector<8x1xi32>
    %cst_9 = arith.constant 0.000000e+00 : f32
    %33 = vector.shape_cast %32 : vector<8x1xi1> to vector<8x1xi1>
    %34 = vector.broadcast %33 : vector<8x1xi1> to vector<8x32xi1>
    %35 = vector.broadcast %cst_9 : f32 to vector<8x32xf32>
    %36 = arith.select %34, %28, %35 : vector<8x32xi1>, vector<8x32xf32>
    %37 = arith.addf %26, %36 : vector<8x32xf32>
    %c0_10 = arith.constant 0 : index
    %c3 = arith.constant 3 : index
    %c0_11 = arith.constant 0 : index
    %38 = tpu.strided_load %arg2[%c0_10, %c3, %c0_11] {strides = array<i32: 1, 4, 1>} : memref<1x32x32xf32, #tpu.memory_space<vmem>>, vector<1x8x32xf32>
    %39 = vector.shape_cast %38 : vector<1x8x32xf32> to vector<8x32xf32>
    %c3_i32 = arith.constant 3 : i32
    %40 = vector.broadcast %c3_i32 : i32 to vector<8x1xi32>
    %41 = arith.addi %5, %40 : vector<8x1xi32>
    %c15_i32_12 = arith.constant 15 : i32
    %42 = vector.broadcast %c15_i32_12 : i32 to vector<8x1xi32>
    %43 = arith.cmpi slt, %41, %42 : vector<8x1xi32>
    %cst_13 = arith.constant 0.000000e+00 : f32
    %44 = vector.shape_cast %43 : vector<8x1xi1> to vector<8x1xi1>
    %45 = vector.broadcast %44 : vector<8x1xi1> to vector<8x32xi1>
    %46 = vector.broadcast %cst_13 : f32 to vector<8x32xf32>
    %47 = arith.select %45, %39, %46 : vector<8x32xi1>, vector<8x32xf32>
    %48 = arith.addf %37, %47 : vector<8x32xf32>
    %c15_i32_14 = arith.constant 15 : i32
    %49 = vector.broadcast %c15_i32_14 : i32 to vector<8x1xi32>
    %50 = arith.subi %49, %5 : vector<8x1xi32>
    %c1_i32_15 = arith.constant 1 : i32
    %c4_i32_16 = arith.constant 4 : i32
    %51 = vector.broadcast %c1_i32_15 : i32 to vector<8x1xi32>
    %52 = arith.maxsi %51, %50 : vector<8x1xi32>
    %53 = vector.broadcast %c4_i32_16 : i32 to vector<8x1xi32>
    %54 = arith.minsi %53, %52 : vector<8x1xi32>
    %55 = arith.sitofp %54 : vector<8x1xi32> to vector<8x1xf32>
    %56 = vector.broadcast %55 : vector<8x1xf32> to vector<8x32xf32>
    %57 = arith.divf %48, %56 : vector<8x32xf32>
    %c0_17 = arith.constant 0 : index
    %c0_18 = arith.constant 0 : index
    %c0_19 = arith.constant 0 : index
    %58 = vector.load %arg3[%c0_17, %c0_18, %c0_19] : memref<1x8x32xf32, #tpu.memory_space<vmem>>, vector<1x8x32xf32>
    %59 = vector.shape_cast %58 : vector<1x8x32xf32> to vector<8x32xf32>
    %60 = vector.shape_cast %57 : vector<8x32xf32> to vector<1x8x32xf32>
    tpu.vector_store %arg3[%c0_17, %c0_18, %c0_19], %60 {strides = array<i32>} : memref<1x8x32xf32, #tpu.memory_space<vmem>>, vector<1x8x32xf32>,
    return
  }
  func.func @transform_0(%arg0: i32, %arg1: i32) -> (i32, i32, i32) {
    %c0_i32 = arith.constant 0 : i32
    %c0_i32_0 = arith.constant 0 : i32
    return %arg0, %arg1, %c0_i32 : i32, i32, i32
  }
  func.func @transform_1(%arg0: i32, %arg1: i32) -> (i32, i32, i32) {
    %c0_i32 = arith.constant 0 : i32
    %c0_i32_0 = arith.constant 0 : i32
    return %arg0, %arg1, %c0_i32 : i32, i32, i32
  }
}

</mosaic_0001>

<bundles_post_ra>
// kernel: tpu_custom_call.1
= control target key start
LH: loop header
LB: loop body
LE: loop exit
PB: predicated region body
PF: predicated region fallthrough
CT: control target
= control target key end

     0   :  { %6 = vsyncpa [#allocation3], 0  ;;  %s573_s0 = inlined_call_operand.vmem [shape: f32[2,15,32], index: 0, kind: input, shape index: {}]   ;;  %s574_s1 = inlined_call_operand.hbm [shape: f32[2,4,32], index: 1, kind: output, shape index: {}]  }
   0x1   :  { %8 = vsyncpa [#allocation3 + $0x1], 0  ;;  %s463_s6 = smov 0   ;;  %s465_s7 = smov 0  }
   0x2   :  { %s467_s8 = smov 0   ;;  %s469_s9 = smov 0  }
   0x3   :  { %s471_s10 = smov 0   ;;  %s473_s11 = smov 0  }
   0x4 LB: > { %s300_s12 = sadd.s32 4294967295, %s448_s11   ;;  %s301_s13 = sadd.s32 4294967294, %s448_s11   ;;  %s448_s11 = sphi %s473_s11, %s14_s11   ;;  %s444_s10 = sphi %s471_s10, %s581_s10   ;;  %s440_s9 = sphi %s469_s9, %s580_s9   ;;  %s436_s8 = sphi %s467_s8, %s579_s8   ;;  %s432_s7 = sphi %s465_s7, %s578_s7   ;;  %s428_s6 = sphi %s463_s6, %s577_s6  }
   0x5   : > { %s26_s14 = sadd.s32 1, %s444_s10  ;;  %s63_s15 = sadd.s32 1, %s436_s8 }
   0x6   : > { %p28_p0 = scmp.ge.s32.totalorder %s26_s14, 2  ;;  %p73_p1 = scmp.ne.s32.totalorder %s436_s8, %s432_s7 }
   0x7   : > { %p74_p2 = scmp.eq.s32.totalorder %s300_s12, 1  ;;  %p79_p3 = scmp.ne.s32.totalorder %s432_s7, %s428_s6 }
   0x8   : > { %s583_s14 = smov (%p28_p0, %s26_s14), 0  ;;  %p80_p5 = scmp.eq.s32.totalorder %s301_s13, 1 }
   0x9   : > { %p503_p4 = por %p74_p2, %p73_p1  ;;  %s58_s17 = ssub.s32 %s444_s10, %s583_s14 }
   0xa   : > { %p304_p6 = scmp.ge.s32.totalorder %s448_s11, 1  ;;  %p61_p7 = scmp.eq.s32.totalorder %s58_s17, 0 }
   0xb   : > { %p510_p8 = por %p80_p5, %p79_p3  ;;  %p115_p9 = scmp.lt.s32.totalorder %s448_s11, 3 }
   0xc   : > { %s516_s19 = scalar_select %p61_p7, %s436_s8, %s63_s15  }
   0xd   : > { %p116_p10 = pnand %p304_p6, %p115_p9 }
   0xe   : > { %s138_s20 = sand.u32 (!%p116_p10), 1, %s432_s7   ;;  %p144_p11 = scmp.lt.s32.totalorder (!%p116_p10), %s440_s9, 1  ;;  %v159_v0 = vlaneseq (!%p116_p10)  ;;  %vm201_vm6 = vcmask (!%p116_p10), 261120  }
   0xf   : > { %119 = sbr.rel (%p116_p10) target bundleno = 67 (0x43), region = 24  ;;  %s305_s26 = sshll.u32 (!%p116_p10), %s138_s20, 3 }
  0x10   : > { %v160_v1 = vshrl.u32 (!%p116_p10), %v159_v0, 7  ;;  %s140_s27 = scalar_lea.vmem (!%p116_p10), [#allocation2], %s305_s26  ;;  %s528_s28 = scalar_lea.sflag (!%p116_p10), [#allocation3], %s138_s20 }
  0x12   : > { %v161_v2 = vmul.u32 (!%p116_p10), 4, %v160_v1 }
  0x14   : > { %v171_v3 = vadd.s32 (!%p116_p10), 1, %v161_v2  ;;  %vm165_vm0 = vcmp.lt.s32.totalorder (!%p116_p10), %v161_v2, 15  ;;  %v193_v4 = vsub.s32 (!%p116_p10), 15, %v161_v2  ;;  %v179_v7 = vadd.s32 (!%p116_p10), 2, %v161_v2 }
  0x15   : > { %v187_v12 = vadd.s32 (!%p116_p10), 3, %v161_v2 }
  0x16   : > { %s145_s21 = scalar_select %p144_p11, %s440_s9, 1  ;;  %vm172_vm1 = vcmp.lt.s32.totalorder %v171_v3, 15  ;;  %vm194_vm2 = vcmp.gt.s32.totalorder %v193_v4, 1  ;;  %vm180_vm4 = vcmp.lt.s32.totalorder %v179_v7, 15 }
  0x17   : > { %v195_v8 = vsel %vm194_vm2, %v193_v4, 1  ;;  %vm188_vm5 = vcmp.lt.s32.totalorder %v187_v12, 15 }
  0x18   : > { %s315_s22 = sshll.u32 %s145_s21, 4  ;;  %vm196_vm3 = vcmp.lt.s32.totalorder %v195_v8, 4 }
  0x19   : > { %s151_s25 = scalar_lea.vmem %s573_s0, %s315_s22  ;;  %v197_v13 = vsel %vm196_vm3, %v195_v8, 4 }
  0x1a   : > { %v164_v5 = vld [vmem:[%s151_s25] ss:$4 sm:$0xff]  ;;  %v308_v6 = vld [vmem:[%s151_s25 + $0x1] ss:$4 sm:$0xff]  ;;  %v309_v11 = vld [vmem:[%s151_s25 + $0x2] ss:$4 sm:$0xff]  ;;  %v198_v14 = vcvt.s32.f32 %v197_v13 }
  0x1b   : > { %v168_v9 = vsel %vm165_vm0, %v164_v5, 0.0  ;;  %v175_v10 = vsel %vm172_vm1, %v308_v6, 0.0  ;;  %v183_v16 = vsel %vm180_vm4, %v309_v11, 0.0  ;;  %v310_v17 = vld [vmem:[%s151_s25 + $0x3] ss:$4 sm:$0xff] }
  0x1c   : > { %v176_v15 = vadd.f32 %v175_v10, %v168_v9  ;;  %372 = vrcp.f32 %v198_v14  ;;  %v191_v19 = vsel %vm188_vm5, %v310_v17, 0.0 }
  0x1e   : > { %v184_v18 = vadd.f32 %v183_v16, %v176_v15 }
  0x20   : > { %v192_v20 = vadd.f32 %v191_v19, %v184_v18 }
  0x23   : > { %210 = sbr.rel (!%p503_p4) target bundleno = 67 (0x43), region = 28 }
  0x26   : > { %v373_v21 = vpop.eup %372 }
  0x27   : > { %v200_v22 = vmul.f32 %v373_v21, %v192_v20 }
  0x29   : > { %202 = vst.msk [vmem:[%s140_s27] sm:$0xff] %vm201_vm6, %v200_v22 }
  0x2a   : > { %216 = vsyncadd %s528_s28, 64  ;;  %s312_s29 = sshll.u32 %s440_s9, 6  ;;  %s222_s30 = sshll.u32 %s140_s27, 4  ;;  %s223_s30 = int_to_ptr.vmem [resolvable:$true] %s222_s30 }
  0x2b   : > { %s537_s4 = scalar_lea.hbm %s574_s1, %s312_s29  ;;  %s374_s5 = scalar_lea.vmem %s223_s30, 64 }
  0x2c   : > { %p375_p12 = scmp.ne.s32.totalorder %s223_s30, %s374_s5  ;;  %s450_s12 = smov [#allocation2]  }
  0x2d   : > { %s376_s13 = sshll.u32 %s450_s12, 4  ;;  %s377_s13 = int_to_ptr.vmem [resolvable:$false] %s376_s13 }
  0x2e   : > { %s378_s15 = scalar_lea.vmem %s377_s13, 256  ;;  %p379_p13 = scmp.lt.s32.totalorder %s223_s30, %s377_s13 }
  0x2f   : > { %p380_p0 = scmp.lt.s32.totalorder %s378_s15, %s374_s5 }
  0x31   : > { %p381_p1 = por %p380_p0, %p379_p13 }
  0x33   : > { %p382_p2 = pnand %p381_p1, %p375_p12 }
  0x35   : > { %385 = shalt.err (!%p382_p2)
}
  0x36   : > { %s386_s9 = scalar_lea.hbm %s537_s4, 64  ;;  %s388_s20 = scalar_lea.hbm %s574_s1, 128 }
  0x37   : > { %p387_p3 = scmp.ne.s32.totalorder %s537_s4, %s386_s9  ;;  %p389_p4 = scmp.lt.u32.totalorder %s537_s4, %s574_s1 }
  0x38   : > { %p390_p5 = scmp.lt.u32.totalorder %s388_s20, %s386_s9  ;;  %p392_p7 = scmp.lt.u32.totalorder %s386_s9, %s537_s4 }
  0x3a   : > { %p391_p6 = por %p390_p5, %p389_p4 }
  0x3c   : > { %p393_p9 = por %p392_p7, %p391_p6 }
  0x3e   : > { %p394_p10 = pnand %p393_p9, %p387_p3 }
  0x40   : > { %397 = shalt.err (!%p394_p10)
}
  0x41   : > { %s451_s23 = smov 64   ;;  %s452_s24 = smov 4  }
  0x42   : > { %228 = dma.vmem_to_hbm [thread:$0]  %s223_s30, 64, %s537_s4, %s528_s28, %s451_s23, %s451_s23, %s452_s24  }
  0x43 PF: > { %p321_p11 = scmp.ge.s32.totalorder %s448_s11, 2  ;;  %s237_s25 = sand.u32 1, %s428_s6  }
  0x44   : > { %s238_s26 = scalar_lea.sflag [#allocation3], %s237_s25 }
  0x45   : > { %p318_p12 = pnand %p321_p11, %p510_p8 }
  0x47   : > { %423 = dma.done.wait (!%p318_p12), %s238_s26, 128  }
  0x48   : > { %425 = vsyncadd (!%p318_p12), %s238_s26, 4294967168  ;;  %s14_s11 = sadd.s32 1, %s448_s11   ;;  %s577_s6 = smov %s432_s7 }
  0x49   : > { %p11_p13 = scmp.ge.s32.totalorder %s14_s11, 4   ;;  %s578_s7 = smov %s436_s8 }
  0x4a   : > { %s579_s8 = smov %s516_s19  ;;  %s580_s9 = smov %s444_s10 }
  0x4b   : > { %s581_s10 = smov %s583_s14  ;;  %13 = sbr.rel (!%p11_p13) target bundleno = 4 (0x4), region = 62 }
  0x52   :  { %243 = vsyncpa [#allocation3], 1 }
  0x53   :  { %245 = vsyncpa [#allocation3 + $0x1], 1 }

</bundles_post_ra>
